<compile_context>
chip_gen: v5e
topology: v5e:2x2
jax: 0.10.0
libtpu: 0.0.40
codegen_flags: <defaults>
</compile_context>

<pallas_src>
import jax
import jax.numpy as jnp
from jax.experimental import pallas as pl
from jax.experimental.pallas import tpu as pltpu

LN_EPS = 1e-5  # nn.LayerNorm default


def _vmem_limit_bytes():
    """Generation-aware VMEM limit: ~7/8 of physical per-core VMEM, capped."""
    try:
        cap = getattr(pltpu.get_tpu_info(), "vmem_capacity_bytes", None)
    except Exception:
        cap = None
    if not cap:
        cap = 64 * 1024 * 1024  # conservative (v7x-sized) fallback
    return int(min((cap * 7) // 8, 112 * 1024 * 1024))


def _pick_tile_rows(L, c4, c2, in_item, out_item, budget):
    """Largest row tile (multiple of 128, or the whole row axis) within budget."""
    w_bytes = 2 * c4 * c2 * in_item              # folded weight, double-buffered

    def fits(tm):
        step = (2 * tm * c4 * in_item            # input tile, double-buffered
                + 2 * c2 * tm * out_item         # output tile, double-buffered
                + 2 * tm * c4 * 4                # f32 x / centered temporaries
                + 2 * tm * c2 * 4)               # f32 accumulator + transposed tile
        return w_bytes + step <= budget

    if L <= 128:
        return L                                 # block == full dim, always legal
    if L <= 2048 and fits(L):
        return L                                 # one block per batch row
    tm = 128
    while tm + 128 <= min(L, 2048) and fits(tm + 128):
        tm += 128
    return tm


def _patch_merge_kernel(x_ref, w_ref, b_ref, o_ref):
    # x_ref: (1, tm, 4C) tokens, compute dtype, native (dh, dw, c) order
    # w_ref: (4C, 2C)    folded weight (gamma pre-multiplied), compute dtype
    # b_ref: (1, 2C)     folded bias (beta @ W^T), f32
    # o_ref: (1, 2C, tm) output tile (transposed in-kernel)
    x = x_ref[0].astype(jnp.float32)                        # (tm, 4C)
    mean = jnp.mean(x, axis=-1, keepdims=True)
    xc = x - mean
    var = jnp.mean(xc * xc, axis=-1, keepdims=True)
    rstd = jax.lax.rsqrt(var + LN_EPS)                      # (tm, 1)
    # MXU matmul on the centered (un-normalized) rows; the per-row rstd
    # commutes with the contraction, so it is applied to the (tm, 2C) result
    # instead of the (tm, 4C) operand (fewer VPU muls, one less f32 temp).
    acc = jnp.dot(xc.astype(w_ref.dtype), w_ref[...],
                  preferred_element_type=jnp.float32)       # (tm, 2C)
    y = acc * rstd + b_ref[...]
    # Transpose on the XLU (idle slot here) so no wrapper-side output
    # transpose / extra HBM pass is needed.
    o_ref[0] = jnp.transpose(y).astype(o_ref.dtype)         # (2C, tm)


def patch_merging(x, gamma, beta, weight, *, compute_dtype=jnp.bfloat16):
    """x: (B, C, H, W). weight: (2C, 4C) (torch Linear, bias-free).
    gamma/beta: (4C,) LayerNorm affine. Returns (B, 2C, H/2, W/2)."""
    B, C, H, W = x.shape
    assert H % 2 == 0 and W % 2 == 0, "H and W must be even"
    C4, C2 = 4 * C, 2 * C
    Ho, Wo = H // 2, W // 2
    L = Ho * Wo

    # ---- 2x2 gather in ONE pass: NCHW -> (B, L, 4C), native (dh, dw, c) order.
    # The compute-dtype downcast is placed before the transpose so it fuses
    # into the same HBM pass.
    # TODO(synk): fold this pass into the kernel via a strided-BlockSpec DMA of
    # x.reshape(B, C, Ho, 2, Wo, 2) + in-kernel C->lane relayout.
    xv = x.astype(compute_dtype).reshape(B, C, Ho, 2, Wo, 2)
    tokens = jnp.transpose(xv, (0, 2, 4, 3, 5, 1)).reshape(B, L, C4)

    # ---- permute params from torch concat block order [(0,0),(1,0),(0,1),(1,1)]
    #      to native (dh, dw) block order [(0,0),(0,1),(1,0),(1,1)], then fold
    #      the LayerNorm affine into the reduction matmul:
    #      (xhat*gamma + beta) @ W^T == xhat @ (gamma[:,None]*W^T) + beta @ W^T.
    blk = jnp.array([0, 2, 1, 3])  # involution
    gamma_n = gamma.reshape(4, C)[blk].reshape(C4)
    beta_n = beta.reshape(4, C)[blk].reshape(C4)
    w_t = jnp.transpose(weight).reshape(4, C, C2)[blk].reshape(C4, C2)  # (4C, 2C)
    w_prime = (gamma_n[:, None] * w_t).astype(compute_dtype)
    bias = (beta_n.astype(jnp.float32) @ w_t.astype(jnp.float32)).reshape(1, C2)

    # ---- generation-aware tiling (no tail pad: ragged edge block is masked).
    limit = _vmem_limit_bytes()
    tile_budget = max(8 << 20, limit - (8 << 20))
    tm = _pick_tile_rows(L, C4, C2, jnp.dtype(compute_dtype).itemsize,
                         x.dtype.itemsize, tile_budget)
    grid = (B, pl.cdiv(L, tm))

    out = pl.pallas_call(
        _patch_merge_kernel,
        out_shape=jax.ShapeDtypeStruct((B, C2, L), x.dtype),
        grid=grid,
        in_specs=[
            pl.BlockSpec((1, tm, C4), lambda b, i: (b, i, 0)),
            # TODO(synk): pipeline_mode=pl.Buffered(1) on these two constant
            # blocks (halves the weight's VMEM footprint; decisive on v7x at
            # large C) once verified on this JAX version.
            pl.BlockSpec((C4, C2), lambda b, i: (0, 0)),
            pl.BlockSpec((1, C2), lambda b, i: (0, 0)),
        ],
        out_specs=pl.BlockSpec((1, C2, tm), lambda b, i: (b, 0, i)),
        compiler_params=pltpu.CompilerParams(
            dimension_semantics=("parallel", "parallel"),
            vmem_limit_bytes=limit,
        ),
    )(tokens, w_prime, bias)

    # (B, 2C, L) -> (B, 2C, H/2, W/2): pure metadata reshape, no HBM pass.
    return out.reshape(B, C2, Ho, Wo)


# ------------------------- references for the self-test -------------------------

def _reference_f32(x, gamma, beta, weight):
    """Exact PyTorch-order math, all f32."""
    B, C, H, W = x.shape
    xp = jnp.transpose(x, (0, 2, 3, 1))
    xc = jnp.concatenate(
        [xp[:, 0::2, 0::2, :], xp[:, 1::2, 0::2, :],
         xp[:, 0::2, 1::2, :], xp[:, 1::2, 1::2, :]], axis=-1)
    t = xc.reshape(B, -1, 4 * C).astype(jnp.float32)
    mu = jnp.mean(t, axis=-1, keepdims=True)
    var = jnp.mean((t - mu) ** 2, axis=-1, keepdims=True)
    t = (t - mu) * jax.lax.rsqrt(var + LN_EPS) * gamma + beta
    t = t @ jnp.transpose(weight)
    return jnp.transpose(t, (0, 2, 1)).reshape(B, 2 * C, H // 2, W // 2)


def _reference_matched(x, gamma, beta, weight, compute_dtype=jnp.bfloat16):
    """Same numerics as the kernel path: bf16 tokens, folded affine, bf16
    matmul inputs with f32 accumulation, rstd applied post-matmul."""
    B, C, H, W = x.shape
    xp = jnp.transpose(x, (0, 2, 3, 1))
    xc = jnp.concatenate(
        [xp[:, 0::2, 0::2, :], xp[:, 1::2, 0::2, :],
         xp[:, 0::2, 1::2, :], xp[:, 1::2, 1::2, :]], axis=-1)
    t = xc.reshape(B, -1, 4 * C).astype(compute_dtype).astype(jnp.float32)
    mu = jnp.mean(t, axis=-1, keepdims=True)
    ctr = t - mu
    var = jnp.mean(ctr * ctr, axis=-1, keepdims=True)
    rstd = jax.lax.rsqrt(var + LN_EPS)
    w_t = jnp.transpose(weight)
    w_prime = (gamma[:, None] * w_t).astype(compute_dtype)
    bias = beta @ w_t
    y = jnp.dot(ctr.astype(compute_dtype), w_prime,
                preferred_element_type=jnp.float32) * rstd + bias
    y = y.astype(x.dtype)
    return jnp.transpose(y, (0, 2, 1)).reshape(B, 2 * C, H // 2, W // 2)


if __name__ == "__main__":
    key = jax.random.PRNGKey(0)
    kx, kw, kg, kb = jax.random.split(key, 4)

    B, C, H, W = 2, 4, 16, 16
    x = jax.random.normal(kx, (B, C, H, W), dtype=jnp.float32)
    # Linear(4C -> 2C, bias=False) weight is (2C, 4C); LayerNorm(4C) affine (4C,).
    weight = jax.random.normal(kw, (2 * C, 4 * C), dtype=jnp.float32) * 0.1
    gamma = 1.0 + 0.05 * jax.random.normal(kg, (4 * C,), dtype=jnp.float32)
    beta = 0.05 * jax.random.normal(kb, (4 * C,), dtype=jnp.float32)

    fn = jax.jit(patch_merging)
    out = jax.block_until_ready(fn(x, gamma, beta, weight))

    assert out.shape == (B, 2 * C, H // 2, W // 2), out.shape

    ref_matched = _reference_matched(x, gamma, beta, weight)
    ref_f32 = _reference_f32(x, gamma, beta, weight)
    assert jnp.allclose(out, ref_matched, atol=1e-3, rtol=1e-3), \
        "mismatch vs numerics-matched (bf16-matmul) reference"
    assert jnp.allclose(out, ref_f32, atol=5e-2, rtol=5e-2), \
        "mismatch vs f32 reference"

    print("KERNEL_OK")
</pallas_src>

<mosaic_0001>
module attributes {stable_mosaic.version = 11 : i64} {
  func.func @_patch_merge_kernel(%arg0: i32, %arg1: i32, %arg2: memref<1x64x16xbf16, #tpu.memory_space<vmem>>, %arg3: memref<16x8xbf16, #tpu.memory_space<vmem>>, %arg4: memref<1x8xf32, #tpu.memory_space<vmem>>, %arg5: memref<1x8x64xf32, #tpu.memory_space<vmem>>) attributes {dimension_semantics = [#tpu.dimension_semantics<parallel>, #tpu.dimension_semantics<parallel>], iteration_bounds = array<i64: 2, 1>, scalar_prefetch = 0 : i64, scratch_operands = 0 : i64, tpu.core_type = #tpu.core_type<tc>, window_params = [{transform_indices = @transform_0, window_bounds = array<i64: 1, 64, 16>}, {pipeline_mode = #tpu.pipeline_mode<synchronous>, transform_indices = @transform_1, window_bounds = array<i64: 16, 8>}, {pipeline_mode = #tpu.pipeline_mode<synchronous>, transform_indices = @transform_2, window_bounds = array<i64: 1, 8>}, {transform_indices = @transform_3, window_bounds = array<i64: 1, 8, 64>}]} {
    %c0 = arith.constant 0 : index
    %c0_0 = arith.constant 0 : index
    %c0_1 = arith.constant 0 : index
    %0 = vector.load %arg2[%c0, %c0_0, %c0_1] : memref<1x64x16xbf16, #tpu.memory_space<vmem>>, vector<1x64x16xbf16>
    %1 = vector.shape_cast %0 : vector<1x64x16xbf16> to vector<64x16xbf16>
    %2 = arith.extf %1 : vector<64x16xbf16> to vector<64x16xf32>
    %cst = arith.constant dense<0.000000e+00> : vector<64xf32>
    %3 = vector.multi_reduction <add>, %2, %cst [1] : vector<64x16xf32> to vector<64xf32>
    %4 = vector.shape_cast %3 : vector<64xf32> to vector<64x1xf32>
    %cst_2 = arith.constant 1.600000e+01 : f32
    %5 = vector.broadcast %cst_2 : f32 to vector<64x1xf32>
    %6 = arith.divf %4, %5 : vector<64x1xf32>
    %7 = vector.broadcast %6 : vector<64x1xf32> to vector<64x16xf32>
    %8 = arith.subf %2, %7 : vector<64x16xf32>
    %9 = arith.mulf %8, %8 : vector<64x16xf32>
    %cst_3 = arith.constant dense<0.000000e+00> : vector<64xf32>
    %10 = vector.multi_reduction <add>, %9, %cst_3 [1] : vector<64x16xf32> to vector<64xf32>
    %11 = vector.shape_cast %10 : vector<64xf32> to vector<64x1xf32>
    %cst_4 = arith.constant 1.600000e+01 : f32
    %12 = vector.broadcast %cst_4 : f32 to vector<64x1xf32>
    %13 = arith.divf %11, %12 : vector<64x1xf32>
    %cst_5 = arith.constant 9.99999974E-6 : f32
    %14 = vector.broadcast %cst_5 : f32 to vector<64x1xf32>
    %15 = arith.addf %13, %14 : vector<64x1xf32>
    %16 = math.rsqrt %15 : vector<64x1xf32>
    %17 = arith.truncf %8 : vector<64x16xf32> to vector<64x16xbf16>
    %c0_6 = arith.constant 0 : index
    %c0_7 = arith.constant 0 : index
    %18 = vector.load %arg3[%c0_6, %c0_7] : memref<16x8xbf16, #tpu.memory_space<vmem>>, vector<16x8xbf16>
    %cst_8 = arith.constant dense<0.000000e+00> : vector<64x8xf32>
    %19 = tpu.matmul %17, %18, %cst_8 {dimension_numbers = #tpu.dot_dimension_numbers<[1], [0], [0], [1], [0, 0, 1, 1], [], []>} : vector<64x16xbf16>, vector<16x8xbf16>, vector<64x8xf32> -> vector<64x8xf32>
    %20 = vector.broadcast %16 : vector<64x1xf32> to vector<64x8xf32>
    %21 = arith.mulf %19, %20 : vector<64x8xf32>
    %c0_9 = arith.constant 0 : index
    %c0_10 = arith.constant 0 : index
    %22 = vector.load %arg4[%c0_9, %c0_10] : memref<1x8xf32, #tpu.memory_space<vmem>>, vector<1x8xf32>
    %23 = vector.broadcast %22 : vector<1x8xf32> to vector<64x8xf32>
    %24 = arith.addf %21, %23 : vector<64x8xf32>
    %25 = tpu.transpose %24, [1, 0] : vector<64x8xf32> -> vector<8x64xf32>
    %c0_11 = arith.constant 0 : index
    %c0_12 = arith.constant 0 : index
    %c0_13 = arith.constant 0 : index
    %26 = vector.load %arg5[%c0_11, %c0_12, %c0_13] : memref<1x8x64xf32, #tpu.memory_space<vmem>>, vector<1x8x64xf32>
    %27 = vector.shape_cast %26 : vector<1x8x64xf32> to vector<8x64xf32>
    %28 = vector.shape_cast %25 : vector<8x64xf32> to vector<1x8x64xf32>
    tpu.vector_store %arg5[%c0_11, %c0_12, %c0_13], %28 {strides = array<i32>} : memref<1x8x64xf32, #tpu.memory_space<vmem>>, vector<1x8x64xf32>,
    return
  }
  func.func @transform_0(%arg0: i32, %arg1: i32) -> (i32, i32, i32) {
    %c0_i32 = arith.constant 0 : i32
    %c0_i32_0 = arith.constant 0 : i32
    return %arg0, %arg1, %c0_i32 : i32, i32, i32
  }
  func.func @transform_1(%arg0: i32, %arg1: i32) -> (i32, i32) {
    %c0_i32 = arith.constant 0 : i32
    %c0_i32_0 = arith.constant 0 : i32
    %c0_i32_1 = arith.constant 0 : i32
    return %c0_i32, %c0_i32_0 : i32, i32
  }
  func.func @transform_2(%arg0: i32, %arg1: i32) -> (i32, i32) {
    %c0_i32 = arith.constant 0 : i32
    %c0_i32_0 = arith.constant 0 : i32
    %c0_i32_1 = arith.constant 0 : i32
    return %c0_i32, %c0_i32_0 : i32, i32
  }
  func.func @transform_3(%arg0: i32, %arg1: i32) -> (i32, i32, i32) {
    %c0_i32 = arith.constant 0 : i32
    %c0_i32_0 = arith.constant 0 : i32
    return %arg0, %c0_i32, %arg1 : i32, i32, i32
  }
}

</mosaic_0001>

<bundles_post_ra>
// kernel: patch_merging.1
= control target key start
LH: loop header
LB: loop body
LE: loop exit
PB: predicated region body
PF: predicated region fallthrough
CT: control target
= control target key end

     0   :  { %s714_s12 = smov 0   ;;  %s716_s13 = smov 0   ;;  %s858_s0 = inlined_call_operand.vmem [shape: bf16[2,64,16], index: 0, kind: input, shape index: {}]   ;;  %s859_s1 = inlined_call_operand.vmem [shape: bf16[16,8], index: 1, kind: input, shape index: {}]   ;;  %s860_s2 = inlined_call_operand.vmem [shape: f32[1,8], index: 2, kind: input, shape index: {}]   ;;  %s861_s3 = inlined_call_operand.vmem [shape: f32[2,8,64], index: 3, kind: output, shape index: {}]  }
   0x1   :  { %s718_s14 = smov 0  }
   0x2 LB: > { %s25_s15 = sadd.s32 1, %s687_s13  ;;  %p586_p0 = scmp.ge.s32.totalorder %s691_s14, 1  ;;  %s691_s14 = sphi %s718_s14, %s13_s14   ;;  %s687_s13 = sphi %s716_s13, %s863_s13   ;;  %s683_s12 = sphi %s714_s12, %s862_s12  }
   0x3   : > { %p27_p1 = scmp.ge.s32.totalorder %s25_s15, 2  ;;  %p158_p2 = scmp.lt.s32.totalorder %s691_s14, 3 }
   0x5   : > { %s865_s15 = smov (%p27_p1, %s25_s15), 0  ;;  %p159_p3 = pnand %p586_p0, %p158_p2 }
   0x6   : > { %p189_p4 = scmp.lt.s32.totalorder (!%p159_p3), %s683_s12, 1 }
   0x7   : > { %162 = sbr.rel (%p159_p3) target bundleno = 451 (0x1c3), region = 32 }
   0xc   : > { %s867_s12 = smov (!%p189_p4, %s683_s12), 1  ;;  %vm222_vm0 = vcmask 130048   ;;  %v693_v20 = vmov 16.0   ;;  %v601_v21 = vld [vmem:[%s859_s1] sm:$0xff] }
   0xd   : > { %s600_s16 = sshll.u32 %s867_s12, 5  ;;  %651 = vrcp.f32 %v693_v20  ;;  %429 = vmatpush.bf16.msra.mxu0 %v601_v21  ;;  %621 = vmatpush.bf16.msra.mxu1 %v601_v21  ;;  %s589_s24 = sshll.u32 %s867_s12, 3 }
   0xe   : > { %s196_s19 = scalar_lea.vmem %s858_s0, %s600_s16  ;;  %622 = vmatpush.bf16.msra.mxu2 %v601_v21  ;;  %623 = vmatpush.bf16.msra.mxu3 %v601_v21  ;;  %s204_s27 = scalar_lea.vmem %s861_s3, %s589_s24 }
   0xf   : > { %v738_v0 = vld [vmem:[%s196_s19 + $0x8] sm:$0xff]   ;;  %v740_v1 = vld [vmem:[%s196_s19] sm:$0xff]   ;;  %v742_v2 = vld [vmem:[%s196_s19 + $0x10] sm:$0xff]  }
  0x10   : > { %v608_v3 = vunpack.c.l.bf16 %v738_v0  ;;  %v604_v4 = vunpack.c.l.bf16 %v740_v1  ;;  %v612_v5 = vunpack.c.l.bf16 %v742_v2  ;;  %v609_v9 = vunpack.c.h.bf16 %v738_v0  ;;  %v756_v15 = vld [vmem:[%s196_s19 + $0x18] sm:$0xff]  }
  0x11   : > { %v605_v10 = vunpack.c.h.bf16 %v740_v1  ;;  %v613_v11 = vunpack.c.h.bf16 %v742_v2  ;;  %v616_v16 = vunpack.c.l.bf16 %v756_v15  ;;  %v617_v17 = vunpack.c.h.bf16 %v756_v15 }
  0x12   : > { %v229_v6 = vsel %vm222_vm0, %v608_v3, 0.0  ;;  %v223_v7 = vsel %vm222_vm0, %v604_v4, 0.0  ;;  %v235_v8 = vsel %vm222_vm0, %v612_v5, 0.0  ;;  %v232_v12 = vsel %vm222_vm0, %v609_v9, 0.0 }
  0x13   : > { %230 = vadd.xlane.f32.xlu1 %v229_v6  ;;  %224 = vadd.xlane.f32.xlu0 %v223_v7  ;;  %v226_v13 = vsel %vm222_vm0, %v605_v10, 0.0  ;;  %v238_v14 = vsel %vm222_vm0, %v613_v11, 0.0  ;;  %v241_v18 = vsel %vm222_vm0, %v616_v16, 0.0  ;;  %v244_v19 = vsel %vm222_vm0, %v617_v17, 0.0  ;;  %v652_v22 = vpop.eup %651 }
  0x14   : > { %236 = vadd.xlane.f32.xlu2 %v235_v8  ;;  %v248_v23 = vmul.f32 16.0, %v652_v22  ;;  %vm252_vm1 = vweird.f32 %v652_v22 }
  0x16   : > { %v249_v24 = vsub.f32 1.0, %v248_v23 }
  0x18   : > { %v250_v25 = vmul.f32 %v652_v22, %v249_v24 }
  0x1a   : > { %v251_v26 = vadd.f32 %v652_v22, %v250_v25 }
  0x1b   : > { %233 = vadd.xlane.f32.xlu1 %v232_v12  ;;  %227 = vadd.xlane.f32.xlu0 %v226_v13 }
  0x1c   : > { %239 = vadd.xlane.f32.xlu2 %v238_v14  ;;  %v769_v27 = vsel %vm252_vm1, %v652_v22, %v251_v26 }
  0x23   : > { %242 = vadd.xlane.f32.xlu0 %v241_v18  ;;  %245 = vadd.xlane.f32.xlu1 %v244_v19 }
  0x86   : > { %v231_v28 = vpop.xlane.xlu1 %230  ;;  %v225_v29 = vpop.xlane.xlu0 %224 }
  0x87   : > { %v256_v30 = vmul.f32 %v769_v27, %v231_v28  ;;  %v254_v31 = vmul.f32 %v769_v27, %v225_v29  ;;  %v237_v32 = vpop.xlane.xlu2 %236 }
  0x88   : > { %v258_v41 = vmul.f32 %v769_v27, %v237_v32 }
  0x89   : > { %v264_v33 = vsub.f32 %v608_v3, %v256_v30  ;;  %v262_v34 = vsub.f32 %v604_v4, %v254_v31 }
  0x8a   : > { %v266_v48 = vsub.f32 %v612_v5, %v258_v41 }
  0x8b   : > { %v270_v35 = vmul.f32 %v262_v34, %v262_v34  ;;  %v272_v36 = vmul.f32 %v264_v33, %v264_v33 }
  0x8c   : > { %v274_v61 = vmul.f32 %v266_v48, %v266_v48 }
  0x8d   : > { %v278_v37 = vsel %vm222_vm0, %v270_v35, 0.0  ;;  %v284_v38 = vsel %vm222_vm0, %v272_v36, 0.0 }
  0x8e   : > { %v234_v39 = vpop.xlane.xlu1 %233  ;;  %279 = vadd.xlane.f32.xlu2 %v278_v37  ;;  %v228_v40 = vpop.xlane.xlu0 %227  ;;  %285 = vadd.xlane.f32.xlu1 %v284_v38  ;;  %v290_v2 = vsel %vm222_vm0, %v274_v61, 0.0  ;;  %v814_v38 = vld [vmem:[%s860_s2] ss:$0 sm:$0xff] }
  0x8f   : > { %v257_v42 = vmul.f32 %v769_v27, %v234_v39  ;;  %v255_v43 = vmul.f32 %v769_v27, %v228_v40  ;;  %v240_v44 = vpop.xlane.xlu2 %239 }
  0x90   : > { %v259_v45 = vmul.f32 %v769_v27, %v240_v44 }
  0x91   : > { %v265_v46 = vsub.f32 %v609_v9, %v257_v42  ;;  %v263_v47 = vsub.f32 %v605_v10, %v255_v43 }
  0x92   : > { %v267_v49 = vsub.f32 %v613_v11, %v259_v45 }
  0x93   : > { %v398_v50 = vpack.c.bf16 %v263_v47, %v262_v34  ;;  %v399_v51 = vpack.c.bf16 %v265_v46, %v264_v33  ;;  %v273_v52 = vmul.f32 %v265_v46, %v265_v46  ;;  %v271_v53 = vmul.f32 %v263_v47, %v263_v47 }
  0x94   : > { %v400_v54 = vpack.c.bf16 %v267_v49, %v266_v48  ;;  %v275_v55 = vmul.f32 %v267_v49, %v267_v49 }
  0x95   : > { %594 = vmatmul.msk.bf16.vlgmr.msra.gmra.mxu0 %vm222_vm0, %v398_v50  ;;  %595 = vmatmul.msk.bf16.vlgmr.msra.gmra.mxu1 %vm222_vm0, %v399_v51  ;;  %v287_v56 = vsel %vm222_vm0, %v273_v52, 0.0  ;;  %v281_v57 = vsel %vm222_vm0, %v271_v53, 0.0 }
  0x96   : > { %288 = vadd.xlane.f32.xlu2 %v287_v56  ;;  %282 = vadd.xlane.f32.xlu0 %v281_v57  ;;  %v293_v58 = vsel %vm222_vm0, %v275_v55, 0.0  ;;  %v243_v59 = vpop.xlane.xlu0 %242  ;;  %v246_v60 = vpop.xlane.xlu1 %245 }
  0x97   : > { %596 = vmatmul.msk.bf16.vlgmr.msra.gmra.mxu2 %vm222_vm0, %v400_v54  ;;  %294 = vadd.xlane.f32.xlu1 %v293_v58  ;;  %v260_v62 = vmul.f32 %v769_v27, %v243_v59  ;;  %v261_v63 = vmul.f32 %v769_v27, %v246_v60 }
  0x99   : > { %v268_v0 = vsub.f32 %v616_v16, %v260_v62  ;;  %v269_v1 = vsub.f32 %v617_v17, %v261_v63 }
  0x9b   : > { %v276_v3 = vmul.f32 %v268_v0, %v268_v0  ;;  %v401_v4 = vpack.c.bf16 %v269_v1, %v268_v0  ;;  %v277_v6 = vmul.f32 %v269_v1, %v269_v1 }
  0x9d   : > { %v296_v5 = vsel %vm222_vm0, %v276_v3, 0.0  ;;  %597 = vmatmul.msk.bf16.vlgmr.msra.gmra.mxu3 %vm222_vm0, %v401_v4  ;;  %v299_v7 = vsel %vm222_vm0, %v277_v6, 0.0 }
  0x9e   : > { %291 = vadd.xlane.f32.xlu0 %v290_v2  ;;  %297 = vadd.xlane.f32.xlu2 %v296_v5 }
  0xa6   : > { %300 = vadd.xlane.f32.xlu0 %v299_v7 }
 0x101   : > { %v280_v8 = vpop.xlane.xlu2 %279  ;;  %v286_v9 = vpop.xlane.xlu1 %285 }
 0x102   : > { %v302_v10 = vmul.f32 %v280_v8, %v769_v27  ;;  %v304_v11 = vmul.f32 %v286_v9, %v769_v27 }
 0x104   : > { %v310_v12 = vadd.f32 1e-05, %v302_v10  ;;  %v312_v13 = vadd.f32 1e-05, %v304_v11 }
 0x106   : > { %653 = vrsqrt.f32 %v310_v12  ;;  %vm324_vm3 = vweird.f32 %v310_v12  ;;  %vm344_vm6 = vweird.f32 %v312_v13 }
 0x107   : > { %655 = vrsqrt.f32 %v312_v13 }
 0x109   : > { %v289_v14 = vpop.xlane.xlu2 %288  ;;  %v283_v15 = vpop.xlane.xlu0 %282 }
 0x10a   : > { %v305_v16 = vmul.f32 %v289_v14, %v769_v27  ;;  %v303_v17 = vmul.f32 %v283_v15, %v769_v27  ;;  %v295_v33 = vpop.xlane.xlu1 %294 }
 0x10b   : > { %v307_v40 = vmul.f32 %v295_v33, %v769_v27 }
 0x10c   : > { %v654_v18 = vpop.eup %653  ;;  %v799_v19 = vadd.f32 1e-05, %v305_v16  ;;  %v311_v20 = vadd.f32 1e-05, %v303_v17 }
 0x10d   : > { %v801_v21 = vpop.eup %655  ;;  %v319_v22 = vmul.f32 %v654_v18, %v310_v12  ;;  %vm325_vm2 = vweird.f32 %v654_v18  ;;  %v821_v47 = vadd.f32 1e-05, %v307_v40 }
 0x10e   : > { %657 = vrsqrt.f32 %v799_v19  ;;  %v339_v24 = vmul.f32 %v801_v21, %v312_v13  ;;  %vm326_vm4 = vmor %vm324_vm3, %vm325_vm2  ;;  %vm345_vm7 = vweird.f32 %v801_v21  ;;  %vm334_vm8 = vweird.f32 %v311_v20 }
 0x10f   : > { %v320_v23 = vmul.f32 %v654_v18, %v319_v22  ;;  %659 = vrsqrt.f32 %v311_v20  ;;  %vm346_vm10 = vmor %vm344_vm6, %vm345_vm7  ;;  %vm354_vm11 = vweird.f32 %v799_v19  ;;  %vm374_vm1 = vweird.f32 %v821_v47 }
 0x110   : > { %v340_v31 = vmul.f32 %v801_v21, %v339_v24 }
 0x111   : > { %v321_v25 = vmul.f32 0.5, %v320_v23  ;;  %v292_v26 = vpop.xlane.xlu0 %291  ;;  %v298_v51 = vpop.xlane.xlu2 %297 }
 0x112   : > { %v306_v28 = vmul.f32 %v292_v26, %v769_v27  ;;  %v431_v37 = vpop.f32.mrf.mxu0  ;;  %v341_v41 = vmul.f32 0.5, %v340_v31  ;;  %v308_v54 = vmul.f32 %v298_v51, %v769_v27  ;;  %v436_v1 = vpop.f32.mrf.mxu1 }
 0x113   : > { %v322_v29 = vsub.f32 1.5, %v321_v25 }
 0x114   : > { %v806_v30 = vpop.eup %657  ;;  %v809_v32 = vadd.f32 1e-05, %v306_v28  ;;  %v342_v49 = vsub.f32 1.5, %v341_v41  ;;  %v316_v62 = vadd.f32 1e-05, %v308_v54 }
 0x115   : > { %v660_v34 = vpop.eup %659  ;;  %v323_v35 = vmul.f32 %v654_v18, %v322_v29  ;;  %v349_v42 = vmul.f32 %v806_v30, %v799_v19  ;;  %vm355_vm12 = vweird.f32 %v806_v30 }
 0x116   : > { %v329_v36 = vmul.f32 %v660_v34, %v311_v20  ;;  %661 = vrsqrt.f32 %v809_v32  ;;  %vm335_vm5 = vweird.f32 %v660_v34  ;;  %v343_v57 = vmul.f32 %v801_v21, %v342_v49  ;;  %vm356_vm13 = vmor %vm354_vm11, %vm355_vm12 }
 0x117   : > { %v327_v39 = vsel %vm326_vm4, %v654_v18, %v323_v35  ;;  %v350_v48 = vmul.f32 %v806_v30, %v349_v42  ;;  %663 = vrsqrt.f32 %v821_v47  ;;  %vm336_vm9 = vmor %vm334_vm8, %vm335_vm5  ;;  %vm364_vm14 = vweird.f32 %v809_v32 }
 0x118   : > { %v330_v43 = vmul.f32 %v660_v34, %v329_v36  ;;  %v451_v44 = vmul.f32 %v431_v37, %v327_v39  ;;  %v347_v0 = vsel %vm346_vm10, %v801_v21, %v343_v57  ;;  %665 = vrsqrt.f32 %v316_v62 }
 0x119   : > { %v351_v55 = vmul.f32 0.5, %v350_v48  ;;  %v301_v3 = vpop.xlane.xlu0 %300  ;;  %v453_v5 = vmul.f32 %v436_v1, %v347_v0  ;;  %vm384_vm4 = vweird.f32 %v316_v62  ;;  %vm503_vm10 = vcmask 523264  }
 0x11a   : > { %v331_v45 = vmul.f32 0.5, %v330_v43  ;;  %v463_v46 = vadd.f32 %v814_v38, %v451_v44  ;;  %v433_v59 = vpop.f32.mrf.mxu0  ;;  %v309_v6 = vmul.f32 %v301_v3, %v769_v27  ;;  %v438_v16 = vpop.f32.mrf.mxu1 }
 0x11b   : > { %v352_v2 = vsub.f32 1.5, %v351_v55  ;;  %v465_v10 = vadd.f32 %v814_v38, %v453_v5  ;;  %v441_v20 = vpop.f32.mrf.mxu2 }
 0x11c   : > { %v332_v50 = vsub.f32 1.5, %v331_v45  ;;  %471 = vxpose.xlu1.b32.start [1/8] (short) (narrow) %v463_v46, 8  ;;  %v662_v52 = vpop.eup %661  ;;  %v317_v11 = vadd.f32 1e-05, %v309_v6 }
 0x11d   : > { %v359_v56 = vmul.f32 %v662_v52, %v809_v32  ;;  %v664_v4 = vpop.eup %663  ;;  %v353_v9 = vmul.f32 %v806_v30, %v352_v2  ;;  %vm365_vm15 = vweird.f32 %v662_v52 }
 0x11e   : > { %v333_v53 = vmul.f32 %v660_v34, %v332_v50  ;;  %v369_v8 = vmul.f32 %v664_v4, %v821_v47  ;;  %v666_v15 = vpop.eup %665  ;;  %667 = vrsqrt.f32 %v317_v11  ;;  %vm366_vm0 = vmor %vm364_vm14, %vm365_vm15  ;;  %vm375_vm2 = vweird.f32 %v664_v4 }
 0x11f   : > { %v360_v63 = vmul.f32 %v662_v52, %v359_v56  ;;  %v357_v13 = vsel %vm356_vm13, %v806_v30, %v353_v9  ;;  %v379_v18 = vmul.f32 %v666_v15, %v316_v62  ;;  %vm376_vm3 = vmor %vm374_vm1, %vm375_vm2  ;;  %vm385_vm5 = vweird.f32 %v666_v15 }
 0x120   : > { %v337_v58 = vsel %vm336_vm9, %v660_v34, %v333_v53  ;;  %v370_v12 = vmul.f32 %v664_v4, %v369_v8  ;;  %v454_v27 = vmul.f32 %v438_v16, %v357_v13  ;;  %vm386_vm6 = vmor %vm384_vm4, %vm385_vm5  ;;  %v446_v40 = vpop.f32.mrf.mxu3  ;;  %vm394_vm7 = vweird.f32 %v317_v11 }
 0x121   : > { %v452_v60 = vmul.f32 %v433_v59, %v337_v58  ;;  %v361_v7 = vmul.f32 0.5, %v360_v63  ;;  %v380_v22 = vmul.f32 %v666_v15, %v379_v18 }
 0x122   : > { %v371_v17 = vmul.f32 0.5, %v370_v12  ;;  %v466_v21 = vadd.f32 %v814_v38, %v454_v27 }
 0x123   : > { %v464_v61 = vadd.f32 %v814_v38, %v452_v60  ;;  %v362_v14 = vsub.f32 1.5, %v361_v7  ;;  %v381_v28 = vmul.f32 0.5, %v380_v22  ;;  %v443_v34 = vpop.f32.mrf.mxu2 }
 0x124   : > { %v372_v24 = vsub.f32 1.5, %v371_v17  ;;  %v668_v25 = vpop.eup %667 }
 0x125   : > { %472 = vxpose.xlu1.b32.cont [2/8] (short) (narrow) %v464_v61, 8  ;;  %v363_v19 = vmul.f32 %v662_v52, %v362_v14  ;;  %v389_v29 = vmul.f32 %v668_v25, %v317_v11  ;;  %v382_v35 = vsub.f32 1.5, %v381_v28  ;;  %vm395_vm8 = vweird.f32 %v668_v25 }
 0x126   : > { %v373_v30 = vmul.f32 %v664_v4, %v372_v24  ;;  %vm396_vm9 = vmor %vm394_vm7, %vm395_vm8 }
 0x127   : > { %v367_v23 = vsel %vm366_vm0, %v662_v52, %v363_v19  ;;  %v390_v32 = vmul.f32 %v668_v25, %v389_v29  ;;  %v383_v39 = vmul.f32 %v666_v15, %v382_v35 }
 0x128   : > { %v455_v26 = vmul.f32 %v441_v20, %v367_v23  ;;  %v377_v33 = vsel %vm376_vm3, %v664_v4, %v373_v30  ;;  %v448_v48 = vpop.f32.mrf.mxu3 }
 0x129   : > { %v456_v36 = vmul.f32 %v443_v34, %v377_v33  ;;  %v391_v37 = vmul.f32 0.5, %v390_v32  ;;  %v387_v42 = vsel %vm386_vm6, %v666_v15, %v383_v39 }
 0x12a   : > { %v467_v31 = vadd.f32 %v814_v38, %v455_v26  ;;  %v457_v44 = vmul.f32 %v446_v40, %v387_v42 }
 0x12b   : > { %v468_v41 = vadd.f32 %v814_v38, %v456_v36  ;;  %v392_v43 = vsub.f32 1.5, %v391_v37 }
 0x12c   : > { %v469_v46 = vadd.f32 %v814_v38, %v457_v44 }
 0x12d   : > { %473 = vxpose.xlu1.b32.cont [3/8] (short) (narrow) %v465_v10, 8  ;;  %v393_v45 = vmul.f32 %v668_v25, %v392_v43 }
 0x12f   : > { %v397_v47 = vsel %vm396_vm9, %v668_v25, %v393_v45 }
 0x130   : > { %v458_v49 = vmul.f32 %v448_v48, %v397_v47 }
 0x132   : > { %v470_v50 = vadd.f32 %v814_v38, %v458_v49 }
 0x135   : > { %474 = vxpose.xlu1.b32.cont [4/8] (short) (narrow) %v466_v21, 8 }
 0x13d   : > { %475 = vxpose.xlu1.b32.cont [5/8] (short) (narrow) %v467_v31, 8 }
 0x145   : > { %476 = vxpose.xlu1.b32.cont [6/8] (short) (narrow) %v468_v41, 8 }
 0x14d   : > { %477 = vxpose.xlu1.b32.cont [7/8] (short) (narrow) %v469_v46, 8 }
 0x155   : > { %478 = vxpose.xlu1.b32.end [8/8] (short) (narrow) %v470_v50, 8 }
 0x1c1   : > { %v487_v51 = vpop.trf.xlu1 }
 0x1c2   : > { %504 = vst.msk [vmem:[%s204_s27] sm:$0xff] %vm503_vm10, %v487_v51 }
 0x1c3 PF: > { %s13_s14 = sadd.s32 1, %s691_s14   ;;  %s862_s12 = smov %s687_s13 }
 0x1c4   : > { %p10_p5 = scmp.ge.s32.totalorder %s13_s14, 4   ;;  %s863_s13 = smov %s865_s15 }
 0x1c6   :  { %12 = sbr.rel (!%p10_p5) target bundleno = 2 (0x2), region = 62 }

</bundles_post_ra>
